<compile_context>
chip_gen: v6e
topology: v6e:2x2x1
jax: 0.10.0
libtpu: 0.0.40
codegen_flags: <defaults>
</compile_context>

<pallas_src>
import functools

import jax
import jax.numpy as jnp
from jax.experimental import pallas as pl
from jax.experimental.pallas import tpu as pltpu

_BIG = 1e30  # finite sentinel (never push inf through the matmul)


def _round_up(x, mult):
    return ((x + mult - 1) // mult) * mult


def _augment(points, n_pad, neg2):
    """Lane-dense augmented operand (B, 8, n_pad).

    Channels along the K axis:
      neg2=False (points1): [ x,  y,  z, 1, ||p||^2, 0, 0, 0]
      neg2=True  (points2): [-2x,-2y,-2z, ||p||^2, 1, 0, 0, 0]
    Padded points get a 1e30 sentinel in their squared-norm channel so their
    pairwise distances are huge without any in-kernel masking.
    """
    b, n, _ = points.shape
    p = points.astype(jnp.float32)
    sq = jnp.sum(p * p, axis=-1, keepdims=True)              # (B, n, 1)
    ones = jnp.ones((b, n, 1), jnp.float32)
    zeros = jnp.zeros((b, n, 3), jnp.float32)
    if neg2:
        aug = jnp.concatenate([-2.0 * p, sq, ones, zeros], axis=-1)   # (B, n, 8)
        sentinel_ch, ones_ch = 3, 4
    else:
        aug = jnp.concatenate([p, ones, sq, zeros], axis=-1)          # (B, n, 8)
        sentinel_ch, ones_ch = 4, 3
    if n_pad > n:
        pad = jnp.zeros((b, n_pad - n, 8), jnp.float32)
        pad = pad.at[..., sentinel_ch].set(_BIG)
        pad = pad.at[..., ones_ch].set(1.0)
        aug = jnp.concatenate([aug, pad], axis=1)
    return jnp.transpose(aug, (0, 2, 1))                      # (B, 8, n_pad)


def _chamfer_kernel(p1_ref, p2_ref, out_ref,
                    rowmin_ref, colmin_ref, loss_ref,
                    *, w1_over_n, w2_over_m, n_actual, m_actual, tn, tm):
    # p1_ref: (1, 8, tn)  augmented, lane-dense cloud-1 tile
    # p2_ref: (1, 8, tm)  augmented, lane-dense cloud-2 tile
    # out_ref: (1, 1, 1)  per-batch loss
    ni = pl.program_id(1)
    mi = pl.program_id(2)
    n_last = pl.num_programs(1) - 1
    m_last = pl.num_programs(2) - 1

    # ---- init accumulators ---------------------------------------------------
    @pl.when((ni == 0) & (mi == 0))
    def _():
        loss_ref[...] = jnp.zeros((1, 1), jnp.float32)

    @pl.when(mi == 0)
    def _():
        rowmin_ref[...] = jnp.full((tn, 128), _BIG, jnp.float32)

    @pl.when(ni == 0)
    def _():
        colmin_ref[mi] = jnp.full((8, tm), _BIG, jnp.float32)

    # ---- all quadratic work: one K=8 matmul on the MXU ------------------------
    p1t = p1_ref[0]                                   # (8, tn)
    p2t = p2_ref[0]                                   # (8, tm)
    dist = jax.lax.dot_general(
        p1t, p2t,
        dimension_numbers=(((0,), (0,)), ((), ())),   # contract sublane axis
        preferred_element_type=jnp.float32,
        precision=jax.lax.Precision.HIGHEST)          # (tn, tm)

    # ---- deferred reductions: VPU-only min folds into lane/sublane-dense acc --
    rm = rowmin_ref[...]                              # (tn, 128)
    for c in range(tm // 128):
        rm = jnp.minimum(rm, dist[:, c * 128:(c + 1) * 128])
    rowmin_ref[...] = rm

    cm = colmin_ref[mi]                               # (8, tm)
    for r in range(tn // 8):
        cm = jnp.minimum(cm, dist[r * 8:(r + 1) * 8, :])
    colmin_ref[mi] = cm

    # ---- finalize row direction: all of M seen for this N tile ---------------
    @pl.when(mi == m_last)
    def _():
        rmin = jnp.min(rm, axis=1, keepdims=True)               # (tn, 1) XLU reduce
        rmin = jnp.maximum(rmin, 0.0)                           # clamp cancellation
        row_id = ni * tn + jax.lax.broadcasted_iota(jnp.int32, (tn, 1), 0)
        rmin = jnp.where(row_id < n_actual, rmin, 0.0)          # zero padded rows
        loss_ref[...] = loss_ref[...] + w1_over_n * jnp.sum(
            rmin, axis=0, keepdims=True)

    # ---- finalize col direction: all of N seen for this M tile ---------------
    @pl.when(ni == n_last)
    def _():
        cmin = jnp.min(cm, axis=0, keepdims=True)               # (1, tm) XLU reduce
        cmin = jnp.maximum(cmin, 0.0)
        col_id = mi * tm + jax.lax.broadcasted_iota(jnp.int32, (1, tm), 1)
        cmin = jnp.where(col_id < m_actual, cmin, 0.0)          # zero padded cols
        loss_ref[...] = loss_ref[...] + w2_over_m * jnp.sum(
            cmin, axis=1, keepdims=True)

    # ---- emit per-batch loss ---------------------------------------------------
    @pl.when((ni == n_last) & (mi == m_last))
    def _():
        out_ref[...] = loss_ref[...].reshape(1, 1, 1)


def chamfer_distance_loss(points1, points2, w1=1.0, w2=1.0, each_batch=False,
                          tile_n=1024, tile_m=1024):
    assert points1.ndim == 3 and points1.shape[-1] == 3
    assert points2.ndim == 3 and points2.shape[-1] == 3
    assert points1.shape[0] == points2.shape[0]

    b, n, _ = points1.shape
    _, m, _ = points2.shape

    p1 = points1.astype(jnp.float32)
    p2 = points2.astype(jnp.float32)

    # Chamfer distance is translation invariant; removing a shared per-batch
    # centroid keeps ||a||^2 + ||b||^2 - 2<a,b> well conditioned.
    centroid = (jnp.sum(p1, axis=1) + jnp.sum(p2, axis=1)) / float(n + m)
    p1 = p1 - centroid[:, None, :]
    p2 = p2 - centroid[:, None, :]

    # Both clouds are lane-dense, so both tile sizes are lane-axis multiples
    # of 128 (or the full rounded-up extent for small clouds).
    tn = min(_round_up(int(tile_n), 128), _round_up(n, 128))
    tm = min(_round_up(int(tile_m), 128), _round_up(m, 128))
    n_pad = _round_up(n, tn)
    m_pad = _round_up(m, tm)
    n_tiles = n_pad // tn
    m_tiles = m_pad // tm

    p1_aug = _augment(p1, n_pad, neg2=False)   # (B, 8, n_pad)
    p2_aug = _augment(p2, m_pad, neg2=True)    # (B, 8, m_pad)

    kernel = functools.partial(
        _chamfer_kernel,
        w1_over_n=float(w1) / float(n),
        w2_over_m=float(w2) / float(m),
        n_actual=n, m_actual=m, tn=tn, tm=tm)

    per_batch = pl.pallas_call(
        kernel,
        out_shape=jax.ShapeDtypeStruct((b, 1, 1), jnp.float32),
        grid_spec=pltpu.PrefetchScalarGridSpec(
            num_scalar_prefetch=0,
            grid=(b, n_tiles, m_tiles),
            in_specs=[
                pl.BlockSpec((1, 8, tn), lambda bi, ni, mi: (bi, 0, ni)),
                pl.BlockSpec((1, 8, tm), lambda bi, ni, mi: (bi, 0, mi)),
            ],
            out_specs=pl.BlockSpec((1, 1, 1), lambda bi, ni, mi: (bi, 0, 0)),
            scratch_shapes=[
                pltpu.VMEM((tn, 128), jnp.float32),          # lane-dense row-min
                pltpu.VMEM((m_tiles, 8, tm), jnp.float32),   # sublane-partial col-min
                pltpu.VMEM((1, 1), jnp.float32),             # per-batch loss acc
            ],
        ),
        compiler_params=pltpu.CompilerParams(
            dimension_semantics=("parallel", "arbitrary", "arbitrary"),
            vmem_limit_bytes=40 * 1024 * 1024),
    )(p1_aug, p2_aug)

    loss = per_batch.reshape(b)  # (B,) per-batch chamfer loss
    if not each_batch:
        loss = jnp.mean(loss)
    return loss


def _reference(points1, points2, w1=1.0, w2=1.0, each_batch=False):
    diff = points1[:, :, None, :] - points2[:, None, :, :]
    dist = jnp.sum(diff * diff, axis=3)
    dist_min1 = jnp.min(dist, axis=2)
    dist_min2 = jnp.min(jnp.transpose(dist, (0, 2, 1)), axis=2)
    loss = w1 * dist_min1.mean(1) + w2 * dist_min2.mean(1)
    if not each_batch:
        loss = loss.mean()
    return loss


if __name__ == "__main__":
    key = jax.random.PRNGKey(0)
    k1, k2, k3, k4 = jax.random.split(key, 4)

    # Case 1: small clouds (single tile, exercises lane padding via sentinels).
    B, N, M = 2, 16, 8
    points1 = jax.random.normal(k1, (B, N, 3), dtype=jnp.float32)
    points2 = jax.random.normal(k2, (B, M, 3), dtype=jnp.float32)

    out = jax.block_until_ready(
        chamfer_distance_loss(points1, points2, w1=1.0, w2=1.0))
    ref = _reference(points1, points2, w1=1.0, w2=1.0)
    assert jnp.allclose(out, ref, rtol=1e-4, atol=1e-4), (out, ref)

    out_eb = jax.block_until_ready(
        chamfer_distance_loss(points1, points2, each_batch=True))
    ref_eb = _reference(points1, points2, each_batch=True)
    assert jnp.allclose(out_eb, ref_eb, rtol=1e-4, atol=1e-4), (out_eb, ref_eb)

    # Case 2: ragged sizes + weights (exercises row and col sentinel padding).
    B2, N2, M2 = 2, 50, 37
    p1b = jax.random.normal(k3, (B2, N2, 3), dtype=jnp.float32)
    p2b = jax.random.normal(k4, (B2, M2, 3), dtype=jnp.float32)

    out2 = jax.block_until_ready(
        chamfer_distance_loss(p1b, p2b, w1=0.7, w2=1.3, each_batch=True))
    ref2 = _reference(p1b, p2b, w1=0.7, w2=1.3, each_batch=True)
    assert jnp.allclose(out2, ref2, rtol=1e-4, atol=1e-4), (out2, ref2)

    # Case 3: multi-tile in both N and M (exercises accumulator resets/finalize).
    B3, N3, M3 = 2, 300, 260
    p1c = jax.random.normal(k1, (B3, N3, 3), dtype=jnp.float32) * 3.0
    p2c = jax.random.normal(k2, (B3, M3, 3), dtype=jnp.float32) * 3.0
    out3 = jax.block_until_ready(
        chamfer_distance_loss(p1c, p2c, tile_n=128, tile_m=128))
    ref3 = _reference(p1c, p2c)
    assert jnp.allclose(out3, ref3, rtol=1e-4, atol=1e-4), (out3, ref3)

    print("KERNEL_OK")
</pallas_src>

<mosaic_0001>
module attributes {stable_mosaic.version = 11 : i64} {
  func.func @_chamfer_kernel(%arg0: i32, %arg1: i32, %arg2: i32, %arg3: memref<1x8x128xf32, #tpu.memory_space<vmem>>, %arg4: memref<1x8x128xf32, #tpu.memory_space<vmem>>, %arg5: memref<1x1x1xf32, #tpu.memory_space<vmem>>, %arg6: memref<128x128xf32, #tpu.memory_space<vmem>>, %arg7: memref<1x8x128xf32, #tpu.memory_space<vmem>>, %arg8: memref<1x1xf32, #tpu.memory_space<vmem>>) attributes {dimension_semantics = [#tpu.dimension_semantics<parallel>, #tpu.dimension_semantics<arbitrary>, #tpu.dimension_semantics<arbitrary>], iteration_bounds = array<i64: 2, 1, 1>, scalar_prefetch = 0 : i64, scratch_operands = 3 : i64, tpu.core_type = #tpu.core_type<tc>, window_params = [{transform_indices = @transform_0, window_bounds = array<i64: 1, 8, 128>}, {transform_indices = @transform_1, window_bounds = array<i64: 1, 8, 128>}, {transform_indices = @transform_2, window_bounds = array<i64: 1, 1, 1>}]} {
    %c0_i32 = arith.constant 0 : i32
    %0 = arith.cmpi eq, %arg1, %c0_i32 : i32
    %c0_i32_0 = arith.constant 0 : i32
    %1 = arith.cmpi eq, %arg2, %c0_i32_0 : i32
    %2 = arith.andi %0, %1 : i1
    %3 = arith.extui %2 : i1 to i32
    %c0_i32_1 = arith.constant 0 : i32
    %4 = arith.cmpi ne, %3, %c0_i32_1 : i32
    scf.if %4 {
      %cst_26 = arith.constant 0.000000e+00 : f32
      %69 = vector.broadcast %cst_26 : f32 to vector<1x1xf32>
      %c0_27 = arith.constant 0 : index
      %c0_28 = arith.constant 0 : index
      %70 = vector.load %arg8[%c0_27, %c0_28] : memref<1x1xf32, #tpu.memory_space<vmem>>, vector<1x1xf32>
      tpu.vector_store %arg8[%c0_27, %c0_28], %69 {strides = array<i32>} : memref<1x1xf32, #tpu.memory_space<vmem>>, vector<1x1xf32>,
    } else {
    }
    %c0_i32_2 = arith.constant 0 : i32
    %5 = arith.cmpi eq, %arg2, %c0_i32_2 : i32
    %6 = arith.extui %5 : i1 to i32
    %c0_i32_3 = arith.constant 0 : i32
    %7 = arith.cmpi ne, %6, %c0_i32_3 : i32
    scf.if %7 {
      %cst_26 = arith.constant 1.000000e+30 : f32
      %69 = vector.broadcast %cst_26 : f32 to vector<128x128xf32>
      %c0_27 = arith.constant 0 : index
      %c0_28 = arith.constant 0 : index
      %70 = vector.load %arg6[%c0_27, %c0_28] : memref<128x128xf32, #tpu.memory_space<vmem>>, vector<128x128xf32>
      tpu.vector_store %arg6[%c0_27, %c0_28], %69 {strides = array<i32>} : memref<128x128xf32, #tpu.memory_space<vmem>>, vector<128x128xf32>,
    } else {
    }
    %c0_i32_4 = arith.constant 0 : i32
    %8 = arith.cmpi eq, %arg1, %c0_i32_4 : i32
    %9 = arith.extui %8 : i1 to i32
    %c0_i32_5 = arith.constant 0 : i32
    %10 = arith.cmpi ne, %9, %c0_i32_5 : i32
    scf.if %10 {
      %cst_26 = arith.constant 1.000000e+30 : f32
      %69 = vector.broadcast %cst_26 : f32 to vector<8x128xf32>
      %70 = arith.index_cast %arg2 : i32 to index
      %c0_27 = arith.constant 0 : index
      %c0_28 = arith.constant 0 : index
      %71 = vector.load %arg7[%70, %c0_27, %c0_28] : memref<1x8x128xf32, #tpu.memory_space<vmem>>, vector<1x8x128xf32>
      %72 = vector.shape_cast %71 : vector<1x8x128xf32> to vector<8x128xf32>
      %73 = vector.shape_cast %69 : vector<8x128xf32> to vector<1x8x128xf32>
      tpu.vector_store %arg7[%70, %c0_27, %c0_28], %73 {strides = array<i32>} : memref<1x8x128xf32, #tpu.memory_space<vmem>>, vector<1x8x128xf32>,
    } else {
    }
    %c0 = arith.constant 0 : index
    %c0_6 = arith.constant 0 : index
    %c0_7 = arith.constant 0 : index
    %11 = vector.load %arg3[%c0, %c0_6, %c0_7] : memref<1x8x128xf32, #tpu.memory_space<vmem>>, vector<1x8x128xf32>
    %12 = vector.shape_cast %11 : vector<1x8x128xf32> to vector<8x128xf32>
    %c0_8 = arith.constant 0 : index
    %c0_9 = arith.constant 0 : index
    %c0_10 = arith.constant 0 : index
    %13 = vector.load %arg4[%c0_8, %c0_9, %c0_10] : memref<1x8x128xf32, #tpu.memory_space<vmem>>, vector<1x8x128xf32>
    %14 = vector.shape_cast %13 : vector<1x8x128xf32> to vector<8x128xf32>
    %cst = arith.constant dense<0.000000e+00> : vector<128x128xf32>
    %15 = tpu.matmul %12, %14, %cst {dimension_numbers = #tpu.dot_dimension_numbers<[0], [0], [1], [1], [0, 1, 1, 1], [], []>, precision = #tpu.contract_precision<fp32>} : vector<8x128xf32>, vector<8x128xf32>, vector<128x128xf32> -> vector<128x128xf32>
    %c0_11 = arith.constant 0 : index
    %c0_12 = arith.constant 0 : index
    %16 = vector.load %arg6[%c0_11, %c0_12] : memref<128x128xf32, #tpu.memory_space<vmem>>, vector<128x128xf32>
    %17 = arith.minimumf %16, %15 : vector<128x128xf32>
    %c0_13 = arith.constant 0 : index
    %c0_14 = arith.constant 0 : index
    %18 = vector.load %arg6[%c0_13, %c0_14] : memref<128x128xf32, #tpu.memory_space<vmem>>, vector<128x128xf32>
    tpu.vector_store %arg6[%c0_13, %c0_14], %17 {strides = array<i32>} : memref<128x128xf32, #tpu.memory_space<vmem>>, vector<128x128xf32>,
    %19 = arith.index_cast %arg2 : i32 to index
    %c0_15 = arith.constant 0 : index
    %c0_16 = arith.constant 0 : index
    %20 = vector.load %arg7[%19, %c0_15, %c0_16] : memref<1x8x128xf32, #tpu.memory_space<vmem>>, vector<1x8x128xf32>
    %21 = vector.shape_cast %20 : vector<1x8x128xf32> to vector<8x128xf32>
    %22 = vector.extract_strided_slice %15 {offsets = [0, 0], sizes = [8, 128], strides = [1, 1]} : vector<128x128xf32> to vector<8x128xf32>
    %23 = arith.minimumf %21, %22 : vector<8x128xf32>
    %24 = vector.extract_strided_slice %15 {offsets = [8, 0], sizes = [8, 128], strides = [1, 1]} : vector<128x128xf32> to vector<8x128xf32>
    %25 = arith.minimumf %23, %24 : vector<8x128xf32>
    %26 = vector.extract_strided_slice %15 {offsets = [16, 0], sizes = [8, 128], strides = [1, 1]} : vector<128x128xf32> to vector<8x128xf32>
    %27 = arith.minimumf %25, %26 : vector<8x128xf32>
    %28 = vector.extract_strided_slice %15 {offsets = [24, 0], sizes = [8, 128], strides = [1, 1]} : vector<128x128xf32> to vector<8x128xf32>
    %29 = arith.minimumf %27, %28 : vector<8x128xf32>
    %30 = vector.extract_strided_slice %15 {offsets = [32, 0], sizes = [8, 128], strides = [1, 1]} : vector<128x128xf32> to vector<8x128xf32>
    %31 = arith.minimumf %29, %30 : vector<8x128xf32>
    %32 = vector.extract_strided_slice %15 {offsets = [40, 0], sizes = [8, 128], strides = [1, 1]} : vector<128x128xf32> to vector<8x128xf32>
    %33 = arith.minimumf %31, %32 : vector<8x128xf32>
    %34 = vector.extract_strided_slice %15 {offsets = [48, 0], sizes = [8, 128], strides = [1, 1]} : vector<128x128xf32> to vector<8x128xf32>
    %35 = arith.minimumf %33, %34 : vector<8x128xf32>
    %36 = vector.extract_strided_slice %15 {offsets = [56, 0], sizes = [8, 128], strides = [1, 1]} : vector<128x128xf32> to vector<8x128xf32>
    %37 = arith.minimumf %35, %36 : vector<8x128xf32>
    %38 = vector.extract_strided_slice %15 {offsets = [64, 0], sizes = [8, 128], strides = [1, 1]} : vector<128x128xf32> to vector<8x128xf32>
    %39 = arith.minimumf %37, %38 : vector<8x128xf32>
    %40 = vector.extract_strided_slice %15 {offsets = [72, 0], sizes = [8, 128], strides = [1, 1]} : vector<128x128xf32> to vector<8x128xf32>
    %41 = arith.minimumf %39, %40 : vector<8x128xf32>
    %42 = vector.extract_strided_slice %15 {offsets = [80, 0], sizes = [8, 128], strides = [1, 1]} : vector<128x128xf32> to vector<8x128xf32>
    %43 = arith.minimumf %41, %42 : vector<8x128xf32>
    %44 = vector.extract_strided_slice %15 {offsets = [88, 0], sizes = [8, 128], strides = [1, 1]} : vector<128x128xf32> to vector<8x128xf32>
    %45 = arith.minimumf %43, %44 : vector<8x128xf32>
    %46 = vector.extract_strided_slice %15 {offsets = [96, 0], sizes = [8, 128], strides = [1, 1]} : vector<128x128xf32> to vector<8x128xf32>
    %47 = arith.minimumf %45, %46 : vector<8x128xf32>
    %48 = vector.extract_strided_slice %15 {offsets = [104, 0], sizes = [8, 128], strides = [1, 1]} : vector<128x128xf32> to vector<8x128xf32>
    %49 = arith.minimumf %47, %48 : vector<8x128xf32>
    %50 = vector.extract_strided_slice %15 {offsets = [112, 0], sizes = [8, 128], strides = [1, 1]} : vector<128x128xf32> to vector<8x128xf32>
    %51 = arith.minimumf %49, %50 : vector<8x128xf32>
    %52 = vector.extract_strided_slice %15 {offsets = [120, 0], sizes = [8, 128], strides = [1, 1]} : vector<128x128xf32> to vector<8x128xf32>
    %53 = arith.minimumf %51, %52 : vector<8x128xf32>
    %54 = arith.index_cast %arg2 : i32 to index
    %c0_17 = arith.constant 0 : index
    %c0_18 = arith.constant 0 : index
    %55 = vector.load %arg7[%54, %c0_17, %c0_18] : memref<1x8x128xf32, #tpu.memory_space<vmem>>, vector<1x8x128xf32>
    %56 = vector.shape_cast %55 : vector<1x8x128xf32> to vector<8x128xf32>
    %57 = vector.shape_cast %53 : vector<8x128xf32> to vector<1x8x128xf32>
    tpu.vector_store %arg7[%54, %c0_17, %c0_18], %57 {strides = array<i32>} : memref<1x8x128xf32, #tpu.memory_space<vmem>>, vector<1x8x128xf32>,
    %c0_i32_19 = arith.constant 0 : i32
    %58 = arith.cmpi eq, %arg2, %c0_i32_19 : i32
    %59 = arith.extui %58 : i1 to i32
    %c0_i32_20 = arith.constant 0 : i32
    %60 = arith.cmpi ne, %59, %c0_i32_20 : i32
    scf.if %60 {
      %cst_26 = arith.constant dense<0x7F800000> : vector<128xf32>
      %69 = vector.multi_reduction <minimumf>, %17, %cst_26 [1] : vector<128x128xf32> to vector<128xf32>
      %70 = vector.shape_cast %69 : vector<128xf32> to vector<128x1xf32>
      %cst_27 = arith.constant 0.000000e+00 : f32
      %71 = vector.broadcast %cst_27 : f32 to vector<128x1xf32>
      %72 = arith.maximumf %70, %71 : vector<128x1xf32>
      %c128_i32 = arith.constant 128 : i32
      %73 = arith.muli %arg1, %c128_i32 : i32
      %74 = tpu.iota {dimensions = array<i32: 0>} : vector<128x1xi32>
      %75 = vector.broadcast %73 : i32 to vector<128x1xi32>
      %76 = arith.addi %75, %74 : vector<128x1xi32>
      %c16_i32 = arith.constant 16 : i32
      %77 = vector.broadcast %c16_i32 : i32 to vector<128x1xi32>
      %78 = arith.cmpi slt, %76, %77 : vector<128x1xi32>
      %cst_28 = arith.constant 0.000000e+00 : f32
      %79 = vector.broadcast %cst_28 : f32 to vector<128x1xf32>
      %80 = arith.select %78, %72, %79 : vector<128x1xi1>, vector<128x1xf32>
      %c0_29 = arith.constant 0 : index
      %c0_30 = arith.constant 0 : index
      %81 = vector.load %arg8[%c0_29, %c0_30] : memref<1x1xf32, #tpu.memory_space<vmem>>, vector<1x1xf32>
      %cst_31 = arith.constant dense<0.000000e+00> : vector<1xf32>
      %82 = vector.multi_reduction <add>, %80, %cst_31 [0] : vector<128x1xf32> to vector<1xf32>
      %83 = vector.shape_cast %82 : vector<1xf32> to vector<1x1xf32>
      %cst_32 = arith.constant 6.250000e-02 : f32
      %84 = vector.broadcast %cst_32 : f32 to vector<1x1xf32>
      %85 = arith.mulf %84, %83 : vector<1x1xf32>
      %86 = arith.addf %81, %85 : vector<1x1xf32>
      %c0_33 = arith.constant 0 : index
      %c0_34 = arith.constant 0 : index
      %87 = vector.load %arg8[%c0_33, %c0_34] : memref<1x1xf32, #tpu.memory_space<vmem>>, vector<1x1xf32>
      tpu.vector_store %arg8[%c0_33, %c0_34], %86 {strides = array<i32>} : memref<1x1xf32, #tpu.memory_space<vmem>>, vector<1x1xf32>,
    } else {
    }
    %c0_i32_21 = arith.constant 0 : i32
    %61 = arith.cmpi eq, %arg1, %c0_i32_21 : i32
    %62 = arith.extui %61 : i1 to i32
    %c0_i32_22 = arith.constant 0 : i32
    %63 = arith.cmpi ne, %62, %c0_i32_22 : i32
    scf.if %63 {
      %cst_26 = arith.constant dense<0x7F800000> : vector<128xf32>
      %69 = vector.multi_reduction <minimumf>, %53, %cst_26 [0] : vector<8x128xf32> to vector<128xf32>
      %70 = vector.shape_cast %69 : vector<128xf32> to vector<1x128xf32>
      %cst_27 = arith.constant 0.000000e+00 : f32
      %71 = vector.broadcast %cst_27 : f32 to vector<1x128xf32>
      %72 = arith.maximumf %70, %71 : vector<1x128xf32>
      %c128_i32 = arith.constant 128 : i32
      %73 = arith.muli %arg2, %c128_i32 : i32
      %74 = tpu.iota {dimensions = array<i32: 1>} : vector<1x128xi32>
      %75 = vector.broadcast %73 : i32 to vector<1x128xi32>
      %76 = arith.addi %75, %74 : vector<1x128xi32>
      %c8_i32 = arith.constant 8 : i32
      %77 = vector.broadcast %c8_i32 : i32 to vector<1x128xi32>
      %78 = arith.cmpi slt, %76, %77 : vector<1x128xi32>
      %cst_28 = arith.constant 0.000000e+00 : f32
      %79 = vector.broadcast %cst_28 : f32 to vector<1x128xf32>
      %80 = arith.select %78, %72, %79 : vector<1x128xi1>, vector<1x128xf32>
      %c0_29 = arith.constant 0 : index
      %c0_30 = arith.constant 0 : index
      %81 = vector.load %arg8[%c0_29, %c0_30] : memref<1x1xf32, #tpu.memory_space<vmem>>, vector<1x1xf32>
      %cst_31 = arith.constant dense<0.000000e+00> : vector<1xf32>
      %82 = vector.multi_reduction <add>, %80, %cst_31 [1] : vector<1x128xf32> to vector<1xf32>
      %83 = vector.shape_cast %82 : vector<1xf32> to vector<1x1xf32>
      %cst_32 = arith.constant 1.250000e-01 : f32
      %84 = vector.broadcast %cst_32 : f32 to vector<1x1xf32>
      %85 = arith.mulf %84, %83 : vector<1x1xf32>
      %86 = arith.addf %81, %85 : vector<1x1xf32>
      %c0_33 = arith.constant 0 : index
      %c0_34 = arith.constant 0 : index
      %87 = vector.load %arg8[%c0_33, %c0_34] : memref<1x1xf32, #tpu.memory_space<vmem>>, vector<1x1xf32>
      tpu.vector_store %arg8[%c0_33, %c0_34], %86 {strides = array<i32>} : memref<1x1xf32, #tpu.memory_space<vmem>>, vector<1x1xf32>,
    } else {
    }
    %c0_i32_23 = arith.constant 0 : i32
    %64 = arith.cmpi eq, %arg1, %c0_i32_23 : i32
    %c0_i32_24 = arith.constant 0 : i32
    %65 = arith.cmpi eq, %arg2, %c0_i32_24 : i32
    %66 = arith.andi %64, %65 : i1
    %67 = arith.extui %66 : i1 to i32
    %c0_i32_25 = arith.constant 0 : i32
    %68 = arith.cmpi ne, %67, %c0_i32_25 : i32
    scf.if %68 {
      %c0_26 = arith.constant 0 : index
      %c0_27 = arith.constant 0 : index
      %69 = vector.load %arg8[%c0_26, %c0_27] : memref<1x1xf32, #tpu.memory_space<vmem>>, vector<1x1xf32>
      %70 = vector.shape_cast %69 : vector<1x1xf32> to vector<1x1x1xf32>
      %c0_28 = arith.constant 0 : index
      %c0_29 = arith.constant 0 : index
      %c0_30 = arith.constant 0 : index
      %71 = vector.load %arg5[%c0_28, %c0_29, %c0_30] : memref<1x1x1xf32, #tpu.memory_space<vmem>>, vector<1x1x1xf32>
      tpu.vector_store %arg5[%c0_28, %c0_29, %c0_30], %70 {strides = array<i32>} : memref<1x1x1xf32, #tpu.memory_space<vmem>>, vector<1x1x1xf32>,
    } else {
    }
    return
  }
  func.func @transform_0(%arg0: i32, %arg1: i32, %arg2: i32) -> (i32, i32, i32) {
    %c0_i32 = arith.constant 0 : i32
    %c0_i32_0 = arith.constant 0 : i32
    return %arg0, %c0_i32, %arg1 : i32, i32, i32
  }
  func.func @transform_1(%arg0: i32, %arg1: i32, %arg2: i32) -> (i32, i32, i32) {
    %c0_i32 = arith.constant 0 : i32
    %c0_i32_0 = arith.constant 0 : i32
    return %arg0, %c0_i32, %arg2 : i32, i32, i32
  }
  func.func @transform_2(%arg0: i32, %arg1: i32, %arg2: i32) -> (i32, i32, i32) {
    %c0_i32 = arith.constant 0 : i32
    %c0_i32_0 = arith.constant 0 : i32
    %c0_i32_1 = arith.constant 0 : i32
    return %arg0, %c0_i32, %c0_i32_0 : i32, i32, i32
  }
}

</mosaic_0001>

<bundles_post_ra>
// kernel: tpu_custom_call.1
= control target key start
LH: loop header
LB: loop body
LE: loop exit
PB: predicated region body
PF: predicated region fallthrough
CT: control target
= control target key end

     0   :  { %7 = vsyncpa [#allocation6], 0  ;;  %s2740_s0 = inlined_call_operand.hbm [shape: f32[2,8,128], index: 0, kind: input, shape index: {}]   ;;  %s2741_s1 = inlined_call_operand.hbm [shape: f32[2,8,128], index: 1, kind: input, shape index: {}]   ;;  %s2742_s2 = inlined_call_operand.vmem [shape: f32[2,1,1], index: 2, kind: output, shape index: {}]  }
   0x1   :  { %9 = vsyncpa [#allocation6 + $0x1], 0 }
   0x2   :  { %10 = vsyncpa [#allocation8], 0 }
   0x3   :  { %12 = vsyncpa [#allocation8 + $0x1], 0  ;;  %s2228_s9 = smov 0   ;;  %s2230_s10 = smov 0  }
   0x4   :  { %s2232_s11 = smov 0   ;;  %s2234_s12 = smov 0  }
   0x5   :  { %s2236_s13 = smov 0   ;;  %s2238_s14 = smov 0  }
   0x6 LB: > { %s1766_s15 = sadd.s32 4294967295, %s2208_s14   ;;  %s37_s16 = sadd.s32 1, %s2204_s13  ;;  %s2208_s14 = sphi %s2238_s14, %s18_s14   ;;  %s2204_s13 = sphi %s2236_s13, %s2781_s13   ;;  %s2200_s12 = sphi %s2234_s12, %s2780_s12   ;;  %s2196_s11 = sphi %s2232_s11, %s2779_s11   ;;  %s2192_s10 = sphi %s2230_s10, %s2778_s10   ;;  %s2188_s9 = sphi %s2228_s9, %s2777_s9  }
   0x7   : > { %p39_p0 = scmp.ge.s32.totalorder %s37_s16, 2  ;;  %s46_s17 = sadd.s32 1, %s2196_s11 }
   0x8   : > { %p53_p1 = scmp.ne.s32.totalorder %s2196_s11, %s2192_s10  ;;  %p54_p2 = scmp.eq.s32.totalorder %s2208_s14, 0 }
   0x9   : > { %s2783_s16 = smov (%p39_p0, %s37_s16), 0  ;;  %p59_p4 = scmp.ne.s32.totalorder %s2192_s10, %s2188_s9 }
   0xa   : > { %p2264_p3 = por %p54_p2, %p53_p1  ;;  %s41_s19 = ssub.s32 %s2204_s13, %s2783_s16 }
   0xb   : > { %p60_p5 = scmp.eq.s32.totalorder %s1766_s15, 0  ;;  %p44_p6 = scmp.eq.s32.totalorder %s41_s19, 0 }
   0xc   : > { %p2048_p8 = scmp.lt.s32.totalorder %s2208_s14, 2  ;;  %s2280_s22 = sand.u32 1, %s2196_s11  }
   0xd   : > { %p2271_p7 = por %p60_p5, %p59_p4  ;;  %s1771_s23 = sshll.u32 %s2204_s13, 7 }
   0xe   : > { %s2277_s21 = scalar_select %p44_p6, %s2196_s11, %s46_s17  }
   0xf   : > { %s1770_s24 = sshll.u32 %s2280_s22, 3  ;;  %s147_s27 = scalar_lea.hbm %s2740_s0, %s1771_s23 }
  0x10   : > { %s141_s28 = scalar_lea.vmem [#allocation5], %s1770_s24  ;;  %p2289_p9 = pnand %p2048_p8, %p2264_p3 }
  0x11   : > { %s149_s29 = sshll.u32 %s141_s28, 4  ;;  %p1774_p10 = scmp.ge.s32.totalorder %s2208_s14, 1  ;;  %s150_s29 = int_to_ptr.vmem [resolvable:$true] %s149_s29 }
  0x12   : > { %p173_p11 = scmp.lt.s32.totalorder %s2208_s14, 3  ;;  %s138_s3 = scalar_lea.sflag [#allocation6], %s2280_s22 }
  0x13   : > { %p2100_p12 = pneg %p2289_p9  ;;  %s2111_s4 = scalar_lea.vmem %s150_s29, 128 }
  0x14   : > { %p2112_p13 = scmp.ne.s32.totalorder %s150_s29, %s2111_s4  ;;  %s2210_s5 = smov [#allocation5]  }
  0x15   : > { %s2116_s6 = sshll.u32 %s2210_s5, 4  ;;  %s2117_s6 = int_to_ptr.vmem [resolvable:$false] %s2116_s6 }
  0x16   : > { %p2114_p0 = pnand %p2112_p13, %p2100_p12  ;;  %s2118_s7 = scalar_lea.vmem %s2117_s6, 256 }
  0x17   : > { %p2119_p2 = scmp.lt.s32.totalorder %s150_s29, %s2117_s6  ;;  %p2120_p3 = scmp.lt.s32.totalorder %s2118_s7, %s2111_s4 }
  0x18   : > { %p2115_p1 = pneg %p2114_p0 }
  0x19   : > { %p2121_p4 = por %p2120_p3, %p2119_p2 }
  0x1b   : > { %p2122_p5 = pnand %p2121_p4, %p2115_p1 }
  0x1d   : > { %2125 = shalt.err (!%p2122_p5)
}
  0x1e   : > { %2044 = dma.hbm_to_vmem [thread:$0]  (!%p2289_p9), %s147_s27, 128, %s150_s29, %s138_s3  }
  0x1f   : > { %p2307_p6 = pnand %p1774_p10, %p173_p11  ;;  %s166_s17 = scalar_lea.hbm %s2741_s1, %s1771_s23 }
  0x20   : > { %s160_s18 = scalar_lea.vmem [#allocation7], %s1770_s24  ;;  %s157_s25 = scalar_lea.sflag [#allocation8], %s2280_s22 }
  0x21   : > { %s168_s19 = sshll.u32 %s160_s18, 4  ;;  %s2211_s27 = smov [#allocation7]   ;;  %s169_s19 = int_to_ptr.vmem [resolvable:$true] %s168_s19 }
  0x22   : > { %s2139_s26 = scalar_lea.vmem %s169_s19, 128  ;;  %s2144_s28 = sshll.u32 %s2211_s27, 4  ;;  %s2145_s28 = int_to_ptr.vmem [resolvable:$false] %s2144_s28 }
  0x23   : > { %p2140_p8 = scmp.ne.s32.totalorder %s169_s19, %s2139_s26  ;;  %s2146_s29 = scalar_lea.vmem %s2145_s28, 256 }
  0x24   : > { %p2147_p10 = scmp.lt.s32.totalorder %s169_s19, %s2145_s28  ;;  %p2148_p11 = scmp.lt.s32.totalorder %s2146_s29, %s2139_s26 }
  0x25   : > { %p2142_p13 = pnand %p2140_p8, %p2100_p12 }
  0x26   : > { %p2149_p1 = por %p2148_p11, %p2147_p10 }
  0x27   : > { %p2143_p0 = pneg %p2142_p13 }
  0x29   : > { %p2150_p2 = pnand %p2149_p1, %p2143_p0 }
  0x2b   : > { %2153 = shalt.err (!%p2150_p2)
}
  0x2c   : > { %2047 = dma.hbm_to_vmem [thread:$0]  (!%p2289_p9), %s166_s17, 128, %s169_s19, %s157_s25  }
  0x2d   : > { %177 = sbr.rel (%p2307_p6) target bundleno = 686 (0x2ae), region = 28 }
  0x32   : > { %s179_s22 = sand.u32 1, %s2192_s10  }
  0x33   : > { %s1775_s23 = sshll.u32 %s179_s22, 3  ;;  %s180_s24 = scalar_lea.sflag [#allocation6], %s179_s22 }
  0x34   : > { %s183_s3 = scalar_lea.vmem [#allocation5], %s1775_s23 }
  0x35   : > { %2179 = dma.done.wait (%p2271_p7), %s180_s24, 128  }
  0x36   : > { %2181 = vsyncadd (%p2271_p7), %s180_s24, 4294967168  ;;  %s189_s4 = scalar_lea.sflag [#allocation8], %s179_s22  ;;  %s192_s5 = scalar_lea.vmem [#allocation7], %s1775_s23 }
  0x37   : > { %2183 = dma.done.wait (%p2271_p7), %s189_s4, 128  }
  0x38   : > { %2185 = vsyncadd (%p2271_p7), %s189_s4, 4294967168  ;;  %vm225_vm0 = vcmask 0   ;;  %v2212_v0 = vmov 0.0   ;;  %v252_v1 = vld [vmem:[%s183_s3] sm:$0xff]  ;;  %v253_v2 = vld [vmem:[%s192_s5] sm:$0xff]  ;;  %vm286_vm1 = vcmask 64512  }
  0x39   : > { %226 = vst.msk [vmem:[#allocation4] sm:$0x1] %vm225_vm0, %v2212_v0  ;;  %254 = vxpose.xlu0.b32.start.end [1/1] (short) %v252_v1, 128  ;;  %v2332_v3 = vand.u32 4294901760, %v253_v2  ;;  %p216_p7 = scmp.lt.s32.totalorder %s2200_s12, 1 }
  0x3b   : > { %v593_v4 = vsub.f32 %v253_v2, %v2332_v3  ;;  %1881 = vmatprep.subr.mxu0 %v2332_v3  ;;  %s2785_s12 = smov (!%p216_p7, %s2200_s12), 1 }
  0x3c   : > { %1882 = vmatpush3.msra.mxu0 %v2332_v3  ;;  %s218_s6 = scalar_lea.vmem %s2742_s2, %s2785_s12 }
  0x3d   : > { %v2337_v5 = vand.u32 4294901760, %v593_v4  ;;  %1933 = vmatprep.subr.mxu0 %v593_v4 }
  0x3f   : > { %v595_v6 = vsub.f32 %v593_v4, %v2337_v5 }
  0x41   : > { %v596_v7 = vand.u32 4294901760, %v595_v6 }
  0x43   : > { %1907 = vmatprep.subr.mxu1 %v596_v7 }
  0x44   : > { %1908 = vmatpush3.msra.mxu1 %v596_v7 }
  0x45   : > { %1959 = vmatprep.subr.mxu1 %v2332_v3 }
  0xb5   : > { %v270_v8 = vpop.trf.xlu0 }
  0xb6   : > { %v288_v9 = vsel %vm286_vm1, %v270_v8, 0 }
  0xb7   : > { %v2342_v10 = vand.u32 4294901760, %v288_v9 }
  0xb9   : > { %v2345_v11 = vsub.f32 %v288_v9, %v2342_v10  ;;  %1909 = vmatprep.mubr.f32.mxu1 %v2342_v10  ;;  %v271_v12 = vpop.trf.xlu0 }
  0xba   : > { %v291_v13 = vsel %vm286_vm1, %v271_v12, 0 }
  0xbb   : > { %v2349_v14 = vand.u32 4294901760, %v291_v13  ;;  %v403_v15 = vand.u32 4294901760, %v2345_v11 }
  0xbd   : > { %v2353_v16 = vsub.f32 %v291_v13, %v2349_v14  ;;  %1910 = vmatmul.mubr.f32.vlgmr.msra.gmra.mxu1 %v2349_v14  ;;  %v272_v17 = vpop.trf.xlu0  ;;  %v404_v18 = vsub.f32 %v2345_v11, %v403_v15 }
  0xbe   : > { %v294_v19 = vsel %vm286_vm1, %v272_v17, 0  ;;  %1960 = vmatpush3.msra.mxu1 %v2332_v3 }
  0xbf   : > { %v413_v20 = vand.u32 4294901760, %v2353_v16  ;;  %v2362_v21 = vand.u32 4294901760, %v294_v19  ;;  %v405_v22 = vand.u32 4294901760, %v404_v18  ;;  %2011 = vmatprep.subr.mxu1 %v2332_v3 }
  0xc1   : > { %v2366_v23 = vsub.f32 %v294_v19, %v2362_v21  ;;  %1883 = vmatprep.mubr.f32.mxu0 %v405_v22  ;;  %1912 = vmatprep.mubr.f32.mxu1 %v2362_v21  ;;  %v273_v24 = vpop.trf.xlu0  ;;  %v414_v25 = vsub.f32 %v2353_v16, %v413_v20 }
  0xc2   : > { %v297_v26 = vsel %vm286_vm1, %v273_v24, 0 }
  0xc3   : > { %v423_v27 = vand.u32 4294901760, %v2366_v23  ;;  %v2374_v28 = vand.u32 4294901760, %v297_v26  ;;  %v415_v29 = vand.u32 4294901760, %v414_v25 }
  0xc5   : > { %v2377_v30 = vsub.f32 %v297_v26, %v2374_v28  ;;  %1884 = vmatmul.mubr.f32.vlgmr.msra.gmra.mxu0 %v415_v29  ;;  %1913 = vmatmul.mubr.f32.gmra.mxu1 %v2374_v28  ;;  %v274_v31 = vpop.trf.xlu0  ;;  %v424_v32 = vsub.f32 %v2366_v23, %v423_v27 }
  0xc6   : > { %v300_v33 = vsel %vm286_vm1, %v274_v31, 0  ;;  %1934 = vmatpush3.msra.mxu0 %v593_v4 }
  0xc7   : > { %v433_v34 = vand.u32 4294901760, %v2377_v30  ;;  %v2385_v35 = vand.u32 4294901760, %v300_v33  ;;  %v425_v36 = vand.u32 4294901760, %v424_v32  ;;  %1985 = vmatprep.subr.mxu0 %v2337_v5 }
  0xc9   : > { %v2389_v37 = vsub.f32 %v300_v33, %v2385_v35  ;;  %1886 = vmatprep.mubr.f32.mxu0 %v425_v36  ;;  %1915 = vmatprep.mubr.f32.mxu1 %v2385_v35  ;;  %v275_v38 = vpop.trf.xlu0  ;;  %v434_v39 = vsub.f32 %v2377_v30, %v433_v34 }
  0xca   : > { %v303_v40 = vsel %vm286_vm1, %v275_v38, 0 }
  0xcb   : > { %v443_v41 = vand.u32 4294901760, %v2389_v37  ;;  %v2397_v42 = vand.u32 4294901760, %v303_v40  ;;  %v435_v43 = vand.u32 4294901760, %v434_v39 }
  0xcd   : > { %v2400_v44 = vsub.f32 %v303_v40, %v2397_v42  ;;  %1887 = vmatmul.mubr.f32.gmra.mxu0 %v435_v43  ;;  %1916 = vmatmul.mubr.f32.gmra.mxu1 %v2397_v42  ;;  %v276_v45 = vpop.trf.xlu0  ;;  %v444_v46 = vsub.f32 %v2389_v37, %v443_v41 }
  0xce   : > { %v306_v47 = vsel %vm286_vm1, %v276_v45, 0 }
  0xcf   : > { %v453_v48 = vand.u32 4294901760, %v2400_v44  ;;  %v2408_v49 = vand.u32 4294901760, %v306_v47  ;;  %v445_v50 = vand.u32 4294901760, %v444_v46 }
  0xd1   : > { %v2411_v51 = vsub.f32 %v306_v47, %v2408_v49  ;;  %1889 = vmatprep.mubr.f32.mxu0 %v445_v50  ;;  %1918 = vmatprep.mubr.f32.mxu1 %v2408_v49  ;;  %v277_v52 = vpop.trf.xlu0  ;;  %v454_v53 = vsub.f32 %v2400_v44, %v453_v48 }
  0xd2   : > { %v309_v54 = vsel %vm286_vm1, %v277_v52, 0 }
  0xd3   : > { %v463_v55 = vand.u32 4294901760, %v2411_v51  ;;  %v2419_v56 = vand.u32 4294901760, %v309_v54  ;;  %v455_v57 = vand.u32 4294901760, %v454_v53 }
  0xd5   : > { %v2422_v58 = vsub.f32 %v309_v54, %v2419_v56  ;;  %1890 = vmatmul.mubr.f32.gmra.mxu0 %v455_v57  ;;  %1919 = vmatmul.mubr.f32.gmra.mxu1 %v2419_v56  ;;  %v278_v59 = vpop.trf.xlu0  ;;  %v464_v60 = vsub.f32 %v2411_v51, %v463_v55 }
  0xd6   : > { %v312_v61 = vsel %vm286_vm1, %v278_v59, 0 }
  0xd7   : > { %v473_v62 = vand.u32 4294901760, %v2422_v58  ;;  %v2430_v63 = vand.u32 4294901760, %v312_v61  ;;  %v465_v0 = vand.u32 4294901760, %v464_v60 }
  0xd9   : > { %v2433_v1 = vsub.f32 %v312_v61, %v2430_v63  ;;  %1892 = vmatprep.mubr.f32.mxu0 %v465_v0  ;;  %1921 = vmatprep.mubr.f32.mxu1 %v2430_v63  ;;  %v279_v2 = vpop.trf.xlu0  ;;  %v474_v4 = vsub.f32 %v2422_v58, %v473_v62 }
  0xda   : > { %v315_v6 = vsel %vm286_vm1, %v279_v2, 0 }
  0xdb   : > { %v483_v7 = vand.u32 4294901760, %v2433_v1  ;;  %v2441_v8 = vand.u32 4294901760, %v315_v6  ;;  %v475_v9 = vand.u32 4294901760, %v474_v4 }
  0xdd   : > { %v2444_v12 = vsub.f32 %v315_v6, %v2441_v8  ;;  %1893 = vmatmul.mubr.f32.gmra.mxu0 %v475_v9  ;;  %1922 = vmatmul.mubr.f32.gmra.mxu1 %v2441_v8  ;;  %v280_v13 = vpop.trf.xlu0  ;;  %v484_v17 = vsub.f32 %v2433_v1, %v483_v7 }
  0xde   : > { %v318_v18 = vsel %vm286_vm1, %v280_v13, 0 }
  0xdf   : > { %v493_v19 = vand.u32 4294901760, %v2444_v12  ;;  %v2452_v22 = vand.u32 4294901760, %v318_v18  ;;  %v485_v24 = vand.u32 4294901760, %v484_v17 }
  0xe1   : > { %v2455_v25 = vsub.f32 %v318_v18, %v2452_v22  ;;  %1895 = vmatprep.mubr.f32.mxu0 %v485_v24  ;;  %1924 = vmatprep.mubr.f32.mxu1 %v2452_v22  ;;  %v281_v26 = vpop.trf.xlu0  ;;  %v494_v29 = vsub.f32 %v2444_v12, %v493_v19 }
  0xe2   : > { %v321_v31 = vsel %vm286_vm1, %v281_v26, 0 }
  0xe3   : > { %v503_v32 = vand.u32 4294901760, %v2455_v25  ;;  %v2463_v33 = vand.u32 4294901760, %v321_v31  ;;  %v495_v36 = vand.u32 4294901760, %v494_v29 }
  0xe5   : > { %v2466_v38 = vsub.f32 %v321_v31, %v2463_v33  ;;  %1896 = vmatmul.mubr.f32.gmra.mxu0 %v495_v36  ;;  %1925 = vmatmul.mubr.f32.gmra.mxu1 %v2463_v33  ;;  %v282_v39 = vpop.trf.xlu0  ;;  %v504_v40 = vsub.f32 %v2455_v25, %v503_v32 }
  0xe6   : > { %v324_v43 = vsel %vm286_vm1, %v282_v39, 0 }
  0xe7   : > { %v513_v45 = vand.u32 4294901760, %v2466_v38  ;;  %v2474_v46 = vand.u32 4294901760, %v324_v43  ;;  %v505_v47 = vand.u32 4294901760, %v504_v40 }
  0xe9   : > { %v2477_v50 = vsub.f32 %v324_v43, %v2474_v46  ;;  %1898 = vmatprep.mubr.f32.mxu0 %v505_v47  ;;  %1927 = vmatprep.mubr.f32.mxu1 %v2474_v46  ;;  %v283_v52 = vpop.trf.xlu0  ;;  %v514_v53 = vsub.f32 %v2466_v38, %v513_v45 }
  0xea   : > { %v327_v54 = vsel %vm286_vm1, %v283_v52, 0 }
  0xeb   : > { %v523_v57 = vand.u32 4294901760, %v2477_v50  ;;  %v2483_v59 = vand.u32 4294901760, %v327_v54  ;;  %v515_v60 = vand.u32 4294901760, %v514_v53 }
  0xed   : > { %v532_v61 = vsub.f32 %v327_v54, %v2483_v59  ;;  %1899 = vmatmul.mubr.f32.gmra.mxu0 %v515_v60  ;;  %1928 = vmatmul.mubr.f32.gmra.mxu1 %v2483_v59  ;;  %v284_v0 = vpop.trf.xlu0  ;;  %v524_v2 = vsub.f32 %v2477_v50, %v523_v57 }
  0xee   : > { %v330_v4 = vsel %vm286_vm1, %v284_v0, 0 }
  0xef   : > { %v533_v6 = vand.u32 4294901760, %v532_v61  ;;  %v2489_v9 = vand.u32 4294901760, %v330_v4  ;;  %v525_v13 = vand.u32 4294901760, %v524_v2 }
  0xf1   : > { %v542_v17 = vsub.f32 %v330_v4, %v2489_v9  ;;  %1901 = vmatprep.mubr.f32.mxu0 %v525_v13  ;;  %1930 = vmatprep.mubr.f32.mxu1 %v2489_v9  ;;  %v285_v18 = vpop.trf.xlu0  ;;  %v534_v24 = vsub.f32 %v532_v61, %v533_v6 }
  0xf2   : > { %v333_v26 = vsel %vm286_vm1, %v285_v18, 0 }
  0xf3   : > { %v543_v29 = vand.u32 4294901760, %v542_v17  ;;  %v2494_v31 = vand.u32 4294901760, %v333_v26  ;;  %v535_v36 = vand.u32 4294901760, %v534_v24 }
  0xf5   : > { %v552_v39 = vsub.f32 %v333_v26, %v2494_v31  ;;  %1902 = vmatmul.mubr.f32.gmra.mxu0 %v535_v36  ;;  %1931 = vmatmul.mubr.f32.gmra.mxu1 %v2494_v31  ;;  %v544_v40 = vsub.f32 %v542_v17, %v543_v29 }
  0xf6   : > { %1961 = vmatprep.mubr.f32.mxu1 %v403_v15 }
  0xf7   : > { %v553_v43 = vand.u32 4294901760, %v552_v39  ;;  %v545_v47 = vand.u32 4294901760, %v544_v40 }
  0xf9   : > { %1904 = vmatprep.mubr.f32.mxu0 %v545_v47  ;;  %1962 = vmatmul.mubr.f32.vlgmr.msra.gmra.mxu1 %v413_v20  ;;  %v554_v52 = vsub.f32 %v552_v39, %v553_v43 }
  0xfa   : > { %1964 = vmatprep.mubr.f32.mxu1 %v423_v27  ;;  %2012 = vmatpush3.msra.mxu1 %v2332_v3 }
  0xfb   : > { %v555_v53 = vand.u32 4294901760, %v554_v52 }
  0xfd   : > { %1905 = vmatmul.mubr.f32.gmra.mxu0 %v555_v53  ;;  %1965 = vmatmul.mubr.f32.gmra.mxu1 %v433_v34 }
  0xfe   : > { %1935 = vmatprep.mubr.f32.mxu0 %v2345_v11  ;;  %1967 = vmatprep.mubr.f32.mxu1 %v443_v41 }
 0x101   : > { %1936 = vmatmul.mubr.f32.vlgmr.msra.gmra.mxu0 %v2353_v16  ;;  %1968 = vmatmul.mubr.f32.gmra.mxu1 %v453_v48 }
 0x102   : > { %1986 = vmatpush3.msra.mxu0 %v2337_v5  ;;  %1938 = vmatprep.mubr.f32.mxu0 %v2366_v23 }
 0x103   : > { %1970 = vmatprep.mubr.f32.mxu1 %v463_v55 }
 0x105   : > { %1939 = vmatmul.mubr.f32.gmra.mxu0 %v2377_v30  ;;  %1971 = vmatmul.mubr.f32.gmra.mxu1 %v473_v62 }
 0x106   : > { %1941 = vmatprep.mubr.f32.mxu0 %v2389_v37  ;;  %1973 = vmatprep.mubr.f32.mxu1 %v483_v7 }
 0x109   : > { %1942 = vmatmul.mubr.f32.gmra.mxu0 %v2400_v44  ;;  %1974 = vmatmul.mubr.f32.gmra.mxu1 %v493_v19 }
 0x10a   : > { %1944 = vmatprep.mubr.f32.mxu0 %v2411_v51  ;;  %1976 = vmatprep.mubr.f32.mxu1 %v503_v32 }
 0x10d   : > { %1945 = vmatmul.mubr.f32.gmra.mxu0 %v2422_v58  ;;  %1977 = vmatmul.mubr.f32.gmra.mxu1 %v513_v45 }
 0x10e   : > { %1947 = vmatprep.mubr.f32.mxu0 %v2433_v1  ;;  %1979 = vmatprep.mubr.f32.mxu1 %v523_v57 }
 0x111   : > { %1948 = vmatmul.mubr.f32.gmra.mxu0 %v2444_v12  ;;  %1980 = vmatmul.mubr.f32.gmra.mxu1 %v533_v6 }
 0x112   : > { %1950 = vmatprep.mubr.f32.mxu0 %v2455_v25  ;;  %1982 = vmatprep.mubr.f32.mxu1 %v543_v29 }
 0x115   : > { %1951 = vmatmul.mubr.f32.gmra.mxu0 %v2466_v38  ;;  %1983 = vmatmul.mubr.f32.gmra.mxu1 %v553_v43 }
 0x116   : > { %1953 = vmatprep.mubr.f32.mxu0 %v2477_v50  ;;  %2013 = vmatprep.mubr.f32.mxu1 %v2342_v10 }
 0x119   : > { %1954 = vmatmul.mubr.f32.gmra.mxu0 %v532_v61  ;;  %2014 = vmatmul.mubr.f32.vlgmr.msra.gmra.mxu1 %v2349_v14 }
 0x11a   : > { %1956 = vmatprep.mubr.f32.mxu0 %v542_v17  ;;  %2016 = vmatprep.mubr.f32.mxu1 %v2362_v21 }
 0x11d   : > { %1957 = vmatmul.mubr.f32.gmra.mxu0 %v552_v39  ;;  %2017 = vmatmul.mubr.f32.gmra.mxu1 %v2374_v28 }
 0x11e   : > { %1987 = vmatprep.mubr.f32.mxu0 %v2342_v10  ;;  %2019 = vmatprep.mubr.f32.mxu1 %v2385_v35 }
 0x121   : > { %1988 = vmatmul.mubr.f32.vlgmr.msra.gmra.mxu0 %v2349_v14  ;;  %2020 = vmatmul.mubr.f32.gmra.mxu1 %v2397_v42 }
 0x122   : > { %1990 = vmatprep.mubr.f32.mxu0 %v2362_v21  ;;  %2022 = vmatprep.mubr.f32.mxu1 %v2408_v49 }
 0x125   : > { %1991 = vmatmul.mubr.f32.gmra.mxu0 %v2374_v28  ;;  %2023 = vmatmul.mubr.f32.gmra.mxu1 %v2419_v56 }
 0x126   : > { %1993 = vmatprep.mubr.f32.mxu0 %v2385_v35  ;;  %2025 = vmatprep.mubr.f32.mxu1 %v2430_v63 }
 0x129   : > { %1994 = vmatmul.mubr.f32.gmra.mxu0 %v2397_v42  ;;  %2026 = vmatmul.mubr.f32.gmra.mxu1 %v2441_v8 }
 0x12a   : > { %1996 = vmatprep.mubr.f32.mxu0 %v2408_v49  ;;  %2028 = vmatprep.mubr.f32.mxu1 %v2452_v22 }
 0x12d   : > { %1997 = vmatmul.mubr.f32.gmra.mxu0 %v2419_v56  ;;  %2029 = vmatmul.mubr.f32.gmra.mxu1 %v2463_v33 }
 0x12e   : > { %1999 = vmatprep.mubr.f32.mxu0 %v2430_v63  ;;  %2031 = vmatprep.mubr.f32.mxu1 %v2474_v46 }
 0x131   : > { %2000 = vmatmul.mubr.f32.gmra.mxu0 %v2441_v8  ;;  %2032 = vmatmul.mubr.f32.gmra.mxu1 %v2483_v59 }
 0x132   : > { %2002 = vmatprep.mubr.f32.mxu0 %v2452_v22  ;;  %2034 = vmatprep.mubr.f32.mxu1 %v2489_v9 }
 0x135   : > { %2003 = vmatmul.mubr.f32.gmra.mxu0 %v2463_v33  ;;  %2035 = vmatmul.mubr.f32.gmra.mxu1 %v2494_v31 }
 0x136   : > { %2005 = vmatprep.mubr.f32.mxu0 %v2474_v46 }
 0x139   : > { %2006 = vmatmul.mubr.f32.gmra.mxu0 %v2483_v59 }
 0x13a   : > { %2008 = vmatprep.mubr.f32.mxu0 %v2489_v9 }
 0x13d   : > { %2009 = vmatmul.mubr.f32.gmra.mxu0 %v2494_v31 }
 0x17d   : > { %v1911_v3 = vpop.f32.mrf.mxu1 }
 0x17f   : > { %v2567_v5 = vpop.f32.mrf.mxu1 }
 0x185   : > { %v2569_v10 = vpop.f32.mrf.mxu1  ;;  %v1885_v11 = vpop.f32.mrf.mxu0 }
 0x186   : > { %v640_v52 = vadd.f32 %v1911_v3, %v1885_v11 }
 0x187   : > { %v2571_v14 = vpop.f32.mrf.mxu1  ;;  %v407_v15 = vpop.f32.mrf.mxu0 }
 0x18d   : > { %v2573_v16 = vpop.f32.mrf.mxu1  ;;  %v2575_v20 = vpop.f32.mrf.mxu0 }
 0x18f   : > { %v2577_v21 = vpop.f32.mrf.mxu1  ;;  %v2579_v23 = vpop.f32.mrf.mxu0 }
 0x195   : > { %v2581_v27 = vpop.f32.mrf.mxu1  ;;  %v2583_v28 = vpop.f32.mrf.mxu0 }
 0x197   : > { %v2585_v30 = vpop.f32.mrf.mxu1  ;;  %v2587_v34 = vpop.f32.mrf.mxu0 }
 0x19d   : > { %v2589_v35 = vpop.f32.mrf.mxu1  ;;  %v2591_v37 = vpop.f32.mrf.mxu0 }
 0x19f   : > { %v2593_v41 = vpop.f32.mrf.mxu1  ;;  %v2595_v42 = vpop.f32.mrf.mxu0 }
 0x1a5   : > { %v2597_v44 = vpop.f32.mrf.mxu1  ;;  %v2599_v48 = vpop.f32.mrf.mxu0 }
 0x1a7   : > { %v2601_v49 = vpop.f32.mrf.mxu1  ;;  %v2603_v51 = vpop.f32.mrf.mxu0 }
 0x1ad   : > { %v2605_v55 = vpop.f32.mrf.mxu1  ;;  %v2607_v56 = vpop.f32.mrf.mxu0 }
 0x1af   : > { %v2609_v58 = vpop.f32.mrf.mxu1  ;;  %v2611_v62 = vpop.f32.mrf.mxu0 }
 0x1b0   : > { %2747 = vst [vmem:[#allocation11_spill] sm:$0xff] %v2609_v58 }
 0x1b5   : > { %v2613_v63 = vpop.f32.mrf.mxu1  ;;  %v2615_v1 = vpop.f32.mrf.mxu0 }
 0x1b6   : > { %2748 = vst [vmem:[#allocation12_spill] sm:$0xff] %v2613_v63 }
 0x1b7   : > { %v2617_v7 = vpop.f32.mrf.mxu1  ;;  %v2619_v12 = vpop.f32.mrf.mxu0 }
 0x1b8   : > { %2749 = vst [vmem:[#allocation13_spill] sm:$0xff] %v2617_v7 }
 0x1b9   : > { %v1963_v8 = vpop.f32.mrf.mxu1 }
 0x1bb   : > { %v976_v19 = vpop.f32.mrf.mxu1 }
 0x1bd   : > { %v2621_v22 = vpop.f32.mrf.mxu0  ;;  %v1966_v25 = vpop.f32.mrf.mxu1 }
 0x1be   : > { %2750 = vst [vmem:[#allocation14_spill] sm:$0xff] %v2621_v22 }
 0x1bf   : > { %v2623_v32 = vpop.f32.mrf.mxu0  ;;  %v992_v33 = vpop.f32.mrf.mxu1 }
 0x1c0   : > { %2751 = vst [vmem:[#allocation15_spill] sm:$0xff] %v2623_v32 }
 0x1c1   : > { %v1937_v38 = vpop.f32.mrf.mxu0  ;;  %v2625_v45 = vpop.f32.mrf.mxu1 }
 0x1c2   : > { %v805_v32 = vadd.f32 %v1937_v38, %v640_v52  ;;  %v664_v38 = vadd.f32 %v2573_v16, %v2583_v28  ;;  %v670_v28 = vadd.f32 %v2585_v30, %v2595_v42  ;;  %v682_v30 = vadd.f32 %v2593_v41, %v2603_v51 }
 0x1c3   : > { %v797_v46 = vpop.f32.mrf.mxu0  ;;  %v2627_v50 = vpop.f32.mrf.mxu1  ;;  %v700_v41 = vadd.f32 %v2597_v44, %v2607_v56  ;;  %v2762_v56 = vld [vmem:[#allocation11_spill] sm:$0xff] }
 0x1c4   : > { %v985_v3 = vadd.f32 %v1963_v8, %v805_v32 }
 0x1c5   : > { %v1940_v54 = vpop.f32.mrf.mxu0  ;;  %v2629_v57 = vpop.f32.mrf.mxu1 }
 0x1c7   : > { %v811_v59 = vpop.f32.mrf.mxu0  ;;  %v2631_v60 = vpop.f32.mrf.mxu1 }
 0x1c9   : > { %v1943_v61 = vpop.f32.mrf.mxu0  ;;  %v2633_v0 = vpop.f32.mrf.mxu1 }
 0x1cb   : > { %v825_v2 = vpop.f32.mrf.mxu0  ;;  %v2635_v4 = vpop.f32.mrf.mxu1 }
 0x1cd   : > { %v1946_v6 = vpop.f32.mrf.mxu0  ;;  %v2637_v9 = vpop.f32.mrf.mxu1 }
 0x1ce   : > { %2752 = vst [vmem:[#allocation16_spill] sm:$0xff] %v2637_v9  ;;  %v646_v9 = vadd.f32 %v2571_v14, %v2579_v23 }
 0x1cf   : > { %v839_v13 = vpop.f32.mrf.mxu0  ;;  %v2639_v17 = vpop.f32.mrf.mxu1 }
 0x1d0   : > { %2753 = vst [vmem:[#allocation17_spill] sm:$0xff] %v2639_v17  ;;  %v812_v58 = vadd.f32 %v811_v59, %v646_v9 }
 0x1d1   : > { %v2641_v18 = vpop.f32.mrf.mxu0  ;;  %v2643_v24 = vpop.f32.mrf.mxu1 }
 0x1d2   : > { %2754 = vst [vmem:[#allocation18_spill] sm:$0xff] %v2643_v24  ;;  %v634_v24 = vadd.f32 %v2567_v5, %v407_v15  ;;  %v993_v32 = vadd.f32 %v992_v33, %v812_v58  ;;  %v840_v58 = vadd.f32 %v839_v13, %v670_v28 }
 0x1d3   : > { %v2645_v26 = vpop.f32.mrf.mxu0  ;;  %v2647_v29 = vpop.f32.mrf.mxu1 }
 0x1d4   : > { %2755 = vst [vmem:[#allocation19_spill] sm:$0xff] %v2647_v29  ;;  %v798_v22 = vadd.f32 %v797_v46, %v634_v24 }
 0x1d5   : > { %v2649_v31 = vpop.f32.mrf.mxu0  ;;  %v2651_v36 = vpop.f32.mrf.mxu1 }
 0x1d6   : > { %2756 = vst [vmem:[#allocation20_spill] sm:$0xff] %v2651_v36  ;;  %v652_v36 = vadd.f32 %v2569_v10, %v2575_v20  ;;  %v977_v15 = vadd.f32 %v976_v19, %v798_v22  ;;  %v658_v10 = vadd.f32 %v2577_v21, %v2587_v34  ;;  %v676_v19 = vadd.f32 %v2581_v27, %v2591_v37 }
 0x1d7   : > { %v2653_v39 = vpop.f32.mrf.mxu0  ;;  %v2655_v40 = vpop.f32.mrf.mxu1  ;;  %v688_v37 = vadd.f32 %v2589_v35, %v2599_v48  ;;  %v1025_v35 = vadd.f32 %v2631_v60, %v840_v58  ;;  %v694_v48 = vadd.f32 %v2601_v49, %v2611_v62  ;;  %v712_v49 = vadd.f32 %v2605_v55, %v2615_v1  ;;  %v2767_v1 = vld [vmem:[#allocation14_spill] sm:$0xff] }
 0x1d8   : > { %2757 = vst [vmem:[#allocation21_spill] sm:$0xff] %v2655_v40  ;;  %v819_v11 = vadd.f32 %v1940_v54, %v652_v36  ;;  %v826_v8 = vadd.f32 %v825_v2, %v658_v10  ;;  %v706_v62 = vadd.f32 %v2762_v56, %v2619_v12 }
 0x1d9   : > { %v2657_v43 = vpop.f32.mrf.mxu0  ;;  %v2015_v47 = vpop.f32.mrf.mxu1  ;;  %v868_v10 = vadd.f32 %v2653_v39, %v694_v48 }
 0x1da   : > { %2758 = vst [vmem:[#allocation22_spill] sm:$0xff] %v2657_v43  ;;  %v1009_v27 = vadd.f32 %v2627_v50, %v826_v8  ;;  %v854_v50 = vadd.f32 %v2645_v26, %v682_v30 }
 0x1db   : > { %v2659_v53 = vpop.f32.mrf.mxu0  ;;  %v1332_v7 = vpop.f32.mrf.mxu1 }
 0x1dc   : > { %2759 = vst [vmem:[#allocation23_spill] sm:$0xff] %v2659_v53  ;;  %v1041_v44 = vadd.f32 %v2635_v4, %v854_v50 }
 0x1dd   : > { %v2662_v63 = vpop.f32.mrf.mxu0  ;;  %v2018_v29 = vpop.f32.mrf.mxu1 }
 0x1de   : > { %2760 = vst [vmem:[#allocation24_spill] sm:$0xff] %v2662_v63  ;;  %v1001_v63 = vadd.f32 %v1966_v25, %v819_v11 }
 0x1df   : > { %v2666_v17 = vpop.f32.mrf.mxu0  ;;  %v1344_v40 = vpop.f32.mrf.mxu1 }
 0x1e0   : > { %2761 = vst [vmem:[#allocation25_spill] sm:$0xff] %v2666_v17  ;;  %v833_v17 = vadd.f32 %v1943_v61, %v664_v38  ;;  %v847_v61 = vadd.f32 %v1946_v6, %v676_v19 }
 0x1e1   : > { %v1989_v53 = vpop.f32.mrf.mxu0  ;;  %v2021_v43 = vpop.f32.mrf.mxu1 }
 0x1e2   : > { %v1177_v5 = vadd.f32 %v1989_v53, %v985_v3  ;;  %v1017_v25 = vadd.f32 %v2625_v45, %v833_v17  ;;  %v861_v17 = vadd.f32 %v2641_v18, %v688_v37  ;;  %v1033_v13 = vadd.f32 %v2629_v57, %v847_v61 }
 0x1e3   : > { %v1170_v46 = vpop.f32.mrf.mxu0  ;;  %v1356_v24 = vpop.f32.mrf.mxu1  ;;  %v875_v57 = vadd.f32 %v2649_v31, %v700_v41 }
 0x1e4   : > { %v1171_v20 = vadd.f32 %v1170_v46, %v977_v15  ;;  %v1339_v52 = vadd.f32 %v2015_v47, %v1177_v5  ;;  %v1049_v26 = vadd.f32 %v2633_v0, %v861_v17 }
 0x1e5   : > { %v1992_v14 = vpop.f32.mrf.mxu0  ;;  %v2024_v23 = vpop.f32.mrf.mxu1 }
 0x1e6   : > { %v1443_v54 = vmin.f32 %v1339_v52, 1e+30  ;;  %v1333_v59 = vadd.f32 %v1332_v7, %v1171_v20  ;;  %v1189_v9 = vadd.f32 %v1992_v14, %v1001_v63 }
 0x1e7   : > { %v1182_v22 = vpop.f32.mrf.mxu0  ;;  %v1368_v16 = vpop.f32.mrf.mxu1 }
 0x1e8   : > { %v1183_v21 = vadd.f32 %v1182_v22, %v993_v32  ;;  %1499 = vmin.xlane.f32.xlu1 %v1443_v54  ;;  %v1442_v34 = vmin.f32 %v1333_v59, 1e+30  ;;  %v1351_v47 = vadd.f32 %v2018_v29, %v1189_v9  ;;  %v2763_v32 = vld [vmem:[#allocation22_spill] sm:$0xff]  ;;  %v2764_v59 = vld [vmem:[#allocation16_spill] sm:$0xff]  ;;  %v2765_v22 = vld [vmem:[#allocation23_spill] sm:$0xff] }
 0x1e9   : > { %v1995_v36 = vpop.f32.mrf.mxu0  ;;  %v2027_v2 = vpop.f32.mrf.mxu1  ;;  %v889_v0 = vadd.f32 %v2763_v32, %v712_v49  ;;  %v1065_v39 = vadd.f32 %v2764_v59, %v875_v57  ;;  %v2766_v9 = vld [vmem:[#allocation17_spill] sm:$0xff] }
 0x1ea   : > { %v1345_v33 = vadd.f32 %v1344_v40, %v1183_v21  ;;  %1497 = vmin.xlane.f32.xlu0 %v1442_v34  ;;  %v1478_v7 = vmin.f32 %v1442_v34, %v1339_v52  ;;  %v1201_v6 = vadd.f32 %v1995_v36, %v1017_v25  ;;  %v1057_v55 = vadd.f32 %v2766_v9, %v868_v10  ;;  %v2768_v21 = vld [vmem:[#allocation12_spill] sm:$0xff]  ;;  %v2769_v34 = vld [vmem:[#allocation15_spill] sm:$0xff] }
 0x1eb   : > { %v1194_v42 = vpop.f32.mrf.mxu0  ;;  %v1380_v63 = vpop.f32.mrf.mxu1  ;;  %v724_v12 = vadd.f32 %v2768_v21, %v2767_v1 }
 0x1ec   : > { %v1479_v53 = vmin.f32 %v1478_v7, %v1345_v33  ;;  %v1195_v45 = vadd.f32 %v1194_v42, %v1009_v27  ;;  %v1363_v29 = vadd.f32 %v2021_v43, %v1201_v6  ;;  %v2771_v27 = vld [vmem:[#allocation24_spill] sm:$0xff]  ;;  %v2772_v42 = vld [vmem:[#allocation18_spill] sm:$0xff]  ;;  %v2773_v6 = vld [vmem:[#allocation25_spill] sm:$0xff] }
 0x1ed   : > { %v1998_v40 = vpop.f32.mrf.mxu0  ;;  %v2030_v3 = vpop.f32.mrf.mxu1  ;;  %v903_v37 = vadd.f32 %v2771_v27, %v724_v12 }
 0x1ee   : > { %v1357_v11 = vadd.f32 %v1356_v24, %v1195_v45  ;;  %v1480_v5 = vmin.f32 %v1479_v53, %v1351_v47  ;;  %v1213_v18 = vadd.f32 %v1998_v40, %v1033_v13  ;;  %v1081_v47 = vadd.f32 %v2772_v42, %v889_v0  ;;  %v2774_v13 = vld [vmem:[#allocation19_spill] sm:$0xff] }
 0x1ef   : > { %v1206_v51 = vpop.f32.mrf.mxu0  ;;  %v1392_v46 = vpop.f32.mrf.mxu1 }
 0x1f0   : > { %v1481_v15 = vmin.f32 %v1480_v5, %v1357_v11  ;;  %v1207_v38 = vadd.f32 %v1206_v51, %v1025_v35  ;;  %v1375_v52 = vadd.f32 %v2024_v23, %v1213_v18  ;;  %v2770_v23 = vld [vmem:[#allocation13_spill] sm:$0xff] }
 0x1f1   : > { %v2001_v24 = vpop.f32.mrf.mxu0  ;;  %v2033_v54 = vpop.f32.mrf.mxu1  ;;  %v718_v61 = vadd.f32 %v2770_v23, %v2769_v34  ;;  %v1612_v23 = vld [vmem:[#allocation4] sm:$0x1] }
 0x1f2   : > { %v1369_v60 = vadd.f32 %v1368_v16, %v1207_v38  ;;  %v1482_v20 = vmin.f32 %v1481_v15, %v1363_v29  ;;  %v1225_v31 = vadd.f32 %v2001_v24, %v1049_v26  ;;  %v882_v16 = vadd.f32 %v2765_v22, %v706_v62  ;;  %v2775_v15 = vld [vmem:[#allocation20_spill] sm:$0xff]  ;;  %v2776_v38 = vld [vmem:[#allocation21_spill] sm:$0xff] }
 0x1f3   : > { %v1218_v43 = vpop.f32.mrf.mxu0  ;;  %v1404_v30 = vpop.f32.mrf.mxu1  ;;  %v896_v53 = vadd.f32 %v2773_v6, %v718_v61  ;;  %v1097_v18 = vadd.f32 %v2775_v15, %v903_v37 }
 0x1f4   : > { %v1483_v14 = vmin.f32 %v1482_v20, %v1369_v60  ;;  %v1219_v8 = vadd.f32 %v1218_v43, %v1041_v44  ;;  %v1387_v36 = vadd.f32 %v2027_v2, %v1225_v31  ;;  %v1073_v40 = vadd.f32 %v2774_v13, %v882_v16 }
 0x1f5   : > { %v2004_v19 = vpop.f32.mrf.mxu0  ;;  %v2036_v41 = vpop.f32.mrf.mxu1  ;;  %v1089_v57 = vadd.f32 %v2776_v38, %v896_v53 }
 0x1f6   : > { %v1381_v4 = vadd.f32 %v1380_v63, %v1219_v8  ;;  %v1484_v28 = vmin.f32 %v1483_v14, %v1375_v52  ;;  %v1237_v33 = vadd.f32 %v2004_v19, %v1065_v39  ;;  %v1649_v14 = vlaneseq }
 0x1f7   : > { %v1230_v25 = vpop.f32.mrf.mxu0  ;;  %v1416_v20 = vpop.f32.mrf.mxu1 }
 0x1f8   : > { %v1485_v58 = vmin.f32 %v1484_v28, %v1381_v4  ;;  %v1231_v7 = vadd.f32 %v1230_v25, %v1057_v55  ;;  %v1399_v11 = vadd.f32 %v2030_v3, %v1237_v33  ;;  %v1650_v32 = vand.u32 127, %v1649_v14 }
 0x1f9   : > { %v2007_v63 = vpop.f32.mrf.mxu0 }
 0x1fa   : > { %v1393_v45 = vadd.f32 %v1392_v46, %v1231_v7  ;;  %v1486_v17 = vmin.f32 %v1485_v58, %v1387_v36  ;;  %v1249_v35 = vadd.f32 %v2007_v63, %v1081_v47  ;;  %vm1653_vm2 = vcmp.lt.s32.totalorder %v1650_v32, 8 }
 0x1fb   : > { %v1242_v50 = vpop.f32.mrf.mxu0 }
 0x1fc   : > { %v1487_v5 = vmin.f32 %v1486_v17, %v1393_v45  ;;  %v1243_v2 = vadd.f32 %v1242_v50, %v1073_v40  ;;  %v1411_v24 = vadd.f32 %v2033_v54, %v1249_v35 }
 0x1fd   : > { %v2010_v48 = vpop.f32.mrf.mxu0 }
 0x1fe   : > { %v1405_v51 = vadd.f32 %v1404_v30, %v1243_v2  ;;  %v1488_v29 = vmin.f32 %v1487_v5, %v1399_v11  ;;  %v1261_v46 = vadd.f32 %v2010_v48, %v1097_v18 }
 0x1ff   : > { %v1254_v26 = vpop.f32.mrf.mxu0 }
 0x200   : > { %v1489_v10 = vmin.f32 %v1488_v29, %v1405_v51  ;;  %v1255_v60 = vadd.f32 %v1254_v26, %v1089_v57  ;;  %v1423_v3 = vadd.f32 %v2036_v41, %v1261_v46 }
 0x202   : > { %v1417_v44 = vadd.f32 %v1416_v20, %v1255_v60  ;;  %v1490_v49 = vmin.f32 %v1489_v10, %v1411_v24 }
 0x204   : > { %v1491_v56 = vmin.f32 %v1490_v49, %v1417_v44 }
 0x206   : > { %v1492_v62 = vmin.f32 %v1491_v56, %v1423_v3 }
 0x208   : > { %v1641_v43 = vrot.slane %v1492_v62, 4 }
 0x20a   : > { %v1642_v52 = vmin.f32 %v1492_v62, %v1641_v43 }
 0x20c   : > { %v1643_v31 = vrot.slane %v1642_v52, 2 }
 0x20e   : > { %v1644_v8 = vmin.f32 %v1642_v52, %v1643_v31 }
 0x210   : > { %v1645_v0 = vrot.slane %v1644_v8, 1 }
 0x212   : > { %v1646_v59 = vmin.f32 %v1644_v8, %v1645_v0 }
 0x214   : > { %v1647_v39 = vmax.f32 %v1646_v59, 0.0 }
 0x216   : > { %v1654_v54 = vsel %vm1653_vm2, %v1647_v39, 0.0 }
 0x217   : > { %1656 = vadd.xlane.f32.xlu1 %v1654_v54 }
 0x271   : > { %v1500_v19 = vpop.xlane.xlu1 %1499 }
 0x272   : > { %v1530_v16 = vmax.f32 %v1500_v19, 0.0 }
 0x273   : > { %v1498_v22 = vpop.xlane.xlu0 %1497 }
 0x274   : > { %v1529_v4 = vmax.f32 %v1498_v22, 0.0 }
 0x276   : > { %v1613_v28 = vadd.f32 %v1530_v16, %v1529_v4 }
 0x278   : > { %v1628_v9 = vrot.slane %v1613_v28, 4 }
 0x27a   : > { %v1629_v55 = vadd.f32 %v1628_v9, %v1613_v28 }
 0x27c   : > { %v1630_v1 = vrot.slane %v1629_v55, 2 }
 0x27e   : > { %v1631_v21 = vadd.f32 %v1630_v1, %v1629_v55 }
 0x280   : > { %v1632_v12 = vrot.slane %v1631_v21, 1 }
 0x282   : > { %v1633_v34 = vadd.f32 %v1632_v12, %v1631_v21 }
 0x284   : > { %v1634_v61 = vmul.f32 0.0625, %v1633_v34 }
 0x286   : > { %v1635_v25 = vadd.f32 %v1634_v61, %v1612_v23 }
 0x288   : > { %1637 = vst.msk [vmem:[#allocation4] sm:$0x1] %vm225_vm0, %v1635_v25 }
 0x28f   : > { %v1655_v33 = vld [vmem:[#allocation4] sm:$0x1] }
 0x2a0   : > { %v1657_v36 = vpop.xlane.xlu1 %1656 }
 0x2a1   : > { %v1658_v58 = vmul.f32 0.125, %v1657_v36 }
 0x2a3   : > { %v1659_v7 = vadd.f32 %v1658_v58, %v1655_v33 }
 0x2a5   : > { %1661 = vst.msk [vmem:[#allocation4] sm:$0x1] %vm225_vm0, %v1659_v7 }
 0x2ac   : > { %v1664_v27 = vld [vmem:[#allocation4] sm:$0x1] }
 0x2ad   : > { %1666 = vst.msk [vmem:[%s218_s6] sm:$0x1] %vm225_vm0, %v1664_v27 }
 0x2ae PF: > { %s18_s14 = sadd.s32 1, %s2208_s14   ;;  %s2777_s9 = smov %s2192_s10 }
 0x2af   : > { %p15_p9 = scmp.ge.s32.totalorder %s18_s14, 4   ;;  %s2778_s10 = smov %s2196_s11 }
 0x2b0   : > { %s2779_s11 = smov %s2277_s21  ;;  %s2780_s12 = smov %s2204_s13 }
 0x2b1   : > { %s2781_s13 = smov %s2783_s16  ;;  %17 = sbr.rel (!%p15_p9) target bundleno = 6 (0x6), region = 107 }
 0x2b6   :  { %1684 = vsyncpa [#allocation6], 1 }
 0x2b7   :  { %1686 = vsyncpa [#allocation6 + $0x1], 1 }
 0x2b8   :  { %1687 = vsyncpa [#allocation8], 1 }
 0x2b9   :  { %1689 = vsyncpa [#allocation8 + $0x1], 1 }

</bundles_post_ra>
